<compile_context>
chip_gen: v7x
topology: tpu7x:2x2x1
jax: 0.10.0
libtpu: 0.0.40
codegen_flags: <defaults>
</compile_context>

<pallas_src>
import functools

import numpy as np
import jax
import jax.numpy as jnp
from jax.experimental import pallas as pl
from jax.experimental.pallas import tpu as pltpu

BN_EPS = 1e-5


# ---------------------------------------------------------------------------
# Banded ("im2col along W") weight:
#   y[h, w*Co+co] = sum_dy  x[h+dy-p, :] @ B[dy]
# with B[dy][u*Ci+ci, w*Co+co] = W[dy, u-w+p, ci, co] (zero outside kernel
# support), so the W-direction taps AND the W zero-padding live entirely in the
# weight matrix; the H-direction taps are handled in-kernel with sublane rolls.
# ---------------------------------------------------------------------------
def _banded_weight(w_kkio, W):
    K, _, Ci, Co = w_kkio.shape
    p = K // 2
    u = np.arange(W)[:, None]                 # input column position
    w = np.arange(W)[None, :]                 # output column position
    dx = u - w + p                            # (W, W) tap index
    valid = ((dx >= 0) & (dx < K)).astype(np.float32)
    dx_c = np.clip(dx, 0, K - 1)
    b = w_kkio[:, dx_c]                       # (K, W, W, Ci, Co) gather over dx
    b = b * valid[None, :, :, None, None]     # zero the out-of-support taps
    b = jnp.transpose(b, (0, 1, 3, 2, 4))     # (dy, u, ci, w, co)
    return b.reshape(K, W * Ci, W * Co)


# ---------------------------------------------------------------------------
# One-time weight preprocessing (hoisted OUT of the per-call jit path).
# ---------------------------------------------------------------------------
def prepare_params(params, W):
    Cin, Cout = params["w1x1"].shape
    K = params["w_cbr"].shape[0]

    # Eval-mode BN folding: scale into the CBR weight, shift kept as a bias.
    scale = params["bn_gamma"] * jax.lax.rsqrt(params["bn_var"] + BN_EPS)
    shift = params["bn_beta"] - params["bn_mean"] * scale
    w_cbr = params["w_cbr"] * scale[None, None, None, :]

    b1 = _banded_weight(params["w1x1"].reshape(1, 1, Cin, Cout), W)[0]   # (W*Cin, W*Cout)
    b2 = _banded_weight(w_cbr, W)                                        # (K, W*Cout, W*Cout)
    b3 = _banded_weight(params["w_refine"], W)                           # (K, W*Cout, W*Cout)
    shift_slab = jnp.tile(shift, W).reshape(1, W * Cout)                 # (1, W*Cout)
    return {"b1": b1, "b2": b2, "b3": b3, "shift": shift_slab}


# ---------------------------------------------------------------------------
# Fused kernel: conv1x1 -> (conv+BN+ReLU) -> conv + residual, all in VMEM.
# ---------------------------------------------------------------------------
def _make_fused_kernel(Btile, H, W, Cout, K, has_relu):
    WC = W * Cout
    p = K // 2
    M = Btile * H

    def kernel(x_ref, b1_ref, b2_ref, shift_ref, b3_ref, o_ref):
        # (Btile, H, W*Cin) -> (Btile*H, W*Cin) lane-dense slab (pure collapse).
        x = x_ref[...].reshape(M, -1)

        # Per-image row index: masks halo rows that would leak across images
        # after flattening the batch into the sublane axis.
        row = jax.lax.broadcasted_iota(jnp.int32, (M, WC), 0) % H

        def shifted(a, dy):
            # shifted[r] = a[r + (dy - p)] within an image, 0 at the halo.
            off = dy - p
            if off == 0:
                return a
            r = pltpu.roll(a, shift=(-off) % M, axis=0)     # XLU slot (~free)
            if off < 0:
                valid = row >= -off
            else:
                valid = row < H - off
            return jnp.where(valid, r, 0.0)

        # ---- conv_1x1: one lane-dense MXU matmul ----------------------------
        x1 = jnp.dot(x, b1_ref[...], preferred_element_type=jnp.float32)   # (M, WC)

        # ---- ConvBnRelu: K accumulating partial matmuls + BN shift + ReLU ---
        t = jnp.dot(shifted(x1, 0), b2_ref[0], preferred_element_type=jnp.float32)
        for dy in range(1, K):
            t += jnp.dot(shifted(x1, dy), b2_ref[dy],
                         preferred_element_type=jnp.float32)
        t = jnp.maximum(t + shift_ref[...], 0.0)

        # ---- conv_refine + residual (x1 reused straight from vregs) ---------
        out = jnp.dot(shifted(t, 0), b3_ref[0], preferred_element_type=jnp.float32)
        for dy in range(1, K):
            out += jnp.dot(shifted(t, dy), b3_ref[dy],
                           preferred_element_type=jnp.float32)
        out = out + x1
        if has_relu:
            out = jnp.maximum(out, 0.0)
        o_ref[...] = out.reshape(Btile, H, WC).astype(o_ref.dtype)

    return kernel


def _choose_btile(N, H, target_rows=128, min_steps=2):
    # Largest divisor of N with Btile*H <= target_rows (fill the MXU M-dim;
    # ~256 would be even better on v6e/v7x) while keeping >= min_steps grid
    # steps so both v7x TensorCores get work.
    best = 1
    for bt in range(1, N + 1):
        if N % bt:
            continue
        if bt * H > target_rows:
            continue
        if N >= min_steps and N // bt < min_steps:
            continue
        best = bt
    return best


# ---------------------------------------------------------------------------
# Per-call wrapper: layout plumbing + one pallas_call.
# ---------------------------------------------------------------------------
@functools.partial(jax.jit, static_argnames=("has_relu",))
def refine_residual(x_nchw, prepared, has_relu=False):
    N, Cin, H, W = x_nchw.shape
    b1, b2, b3, shift = prepared["b1"], prepared["b2"], prepared["b3"], prepared["shift"]
    K = b2.shape[0]
    WC = b2.shape[-1]
    Cout = WC // W

    Btile = _choose_btile(N, H)
    steps = N // Btile

    # NCHW -> lane-dense NHWC slabs (N, H, W*Cin).
    x_slab = jnp.transpose(x_nchw, (0, 2, 3, 1)).reshape(N, H, W * Cin)

    kernel = _make_fused_kernel(Btile, H, W, Cout, K, has_relu)
    out_slab = pl.pallas_call(
        kernel,
        out_shape=jax.ShapeDtypeStruct((N, H, WC), jnp.float32),
        grid=(steps,),
        in_specs=[
            pl.BlockSpec((Btile, H, W * Cin), lambda b: (b, 0, 0)),   # x slab
            pl.BlockSpec((W * Cin, WC), lambda b: (0, 0)),            # b1
            pl.BlockSpec((K, WC, WC), lambda b: (0, 0, 0)),           # b2 (BN-folded)
            pl.BlockSpec((1, WC), lambda b: (0, 0)),                  # BN shift
            pl.BlockSpec((K, WC, WC), lambda b: (0, 0, 0)),           # b3
        ],
        out_specs=pl.BlockSpec((Btile, H, WC), lambda b: (b, 0, 0)),  # lane-dense
        compiler_params=pltpu.CompilerParams(
            dimension_semantics=("parallel",)),
    )(x_slab, b1, b2, shift, b3)

    # Lane-dense slab -> NCHW at the module boundary.
    return jnp.transpose(out_slab.reshape(N, H, W, Cout), (0, 3, 1, 2))


# ---------------------------- pure-JAX reference ----------------------------
def _ref_conv(x_nhwc, w_hwio, pad):
    return jax.lax.conv_general_dilated(
        x_nhwc, w_hwio, window_strides=(1, 1),
        padding=[(pad, pad), (pad, pad)],
        dimension_numbers=("NHWC", "HWIO", "NHWC"))


def refine_residual_ref(x_nchw, params, has_relu=False):
    x = jnp.transpose(x_nchw, (0, 2, 3, 1))
    Cin, Cout = params["w1x1"].shape
    K = params["w_cbr"].shape[0]
    x1 = _ref_conv(x, params["w1x1"].reshape(1, 1, Cin, Cout), pad=0)
    scale = params["bn_gamma"] / jnp.sqrt(params["bn_var"] + BN_EPS)
    shift = params["bn_beta"] - params["bn_mean"] * scale
    t = _ref_conv(x1, params["w_cbr"], pad=K // 2)
    t = jnp.maximum(t * scale[None, None, None, :] + shift[None, None, None, :], 0.0)
    t = _ref_conv(t, params["w_refine"], pad=K // 2)
    out = t + x1
    if has_relu:
        out = jnp.maximum(out, 0.0)
    return jnp.transpose(out, (0, 3, 1, 2))


if __name__ == "__main__":
    # (in_planes=4, out_planes=8, ksize=3, has_bias=False, has_relu=False)
    N, Cin, H, W = 2, 4, 16, 16
    Cout, K = 8, 3
    has_relu = False

    key = jax.random.PRNGKey(0)
    k0, k1, k2, k3, k4, k5, k6 = jax.random.split(key, 7)

    params = {
        # weights stored directly in kernel layouts: 1x1 -> (Cin, Cout), KxK -> (K, K, Ci, Co)
        "w1x1":     0.2 * jax.random.normal(k0, (Cin, Cout), jnp.float32),
        "w_cbr":    0.1 * jax.random.normal(k1, (K, K, Cout, Cout), jnp.float32),
        "w_refine": 0.1 * jax.random.normal(k2, (K, K, Cout, Cout), jnp.float32),
        # BatchNorm2d params / running stats (eval-mode folding)
        "bn_gamma": 1.0 + 0.1 * jax.random.normal(k3, (Cout,), jnp.float32),
        "bn_beta":  0.1 * jax.random.normal(k4, (Cout,), jnp.float32),
        "bn_mean":  0.1 * jax.random.normal(k5, (Cout,), jnp.float32),
        "bn_var":   0.5 + jnp.abs(jax.random.normal(k6, (Cout,), jnp.float32)),
    }

    # One-time weight preprocessing (outside the per-call path).
    prepared = jax.tree_util.tree_map(jax.block_until_ready, prepare_params(params, W))

    # Main check: N=2 (Btile=1, grid=2 -> both v7x TCs busy).
    kx = jax.random.fold_in(key, 123)
    x = jax.random.normal(kx, (N, Cin, H, W), jnp.float32)
    out = jax.block_until_ready(refine_residual(x, prepared, has_relu=has_relu))
    ref = jax.block_until_ready(refine_residual_ref(x, params, has_relu=has_relu))
    np.testing.assert_allclose(np.asarray(out), np.asarray(ref), rtol=1e-4, atol=1e-4)

    # Secondary check: larger batch exercises the batch-tiled (Btile>1) path
    # and the per-image roll/mask halo handling.
    kx2 = jax.random.fold_in(key, 321)
    x_big = jax.random.normal(kx2, (8, Cin, H, W), jnp.float32)
    out_big = jax.block_until_ready(refine_residual(x_big, prepared, has_relu=has_relu))
    ref_big = jax.block_until_ready(refine_residual_ref(x_big, params, has_relu=has_relu))
    np.testing.assert_allclose(np.asarray(out_big), np.asarray(ref_big), rtol=1e-4, atol=1e-4)

    print("KERNEL_OK")
</pallas_src>

<mosaic_0001>
module attributes {stable_mosaic.version = 11 : i64} {
  func.func @kernel(%arg0: i32, %arg1: memref<1x16x64xf32, #tpu.memory_space<vmem>>, %arg2: memref<64x128xf32, #tpu.memory_space<vmem>>, %arg3: memref<3x128x128xf32, #tpu.memory_space<vmem>>, %arg4: memref<1x128xf32, #tpu.memory_space<vmem>>, %arg5: memref<3x128x128xf32, #tpu.memory_space<vmem>>, %arg6: memref<1x16x128xf32, #tpu.memory_space<vmem>>) attributes {dimension_semantics = [#tpu.dimension_semantics<parallel>], iteration_bounds = array<i64: 2>, scalar_prefetch = 0 : i64, scratch_operands = 0 : i64, tpu.core_type = #tpu.core_type<tc>, window_params = [{transform_indices = @transform_0, window_bounds = array<i64: 1, 16, 64>}, {pipeline_mode = #tpu.pipeline_mode<synchronous>, transform_indices = @transform_1, window_bounds = array<i64: 64, 128>}, {pipeline_mode = #tpu.pipeline_mode<synchronous>, transform_indices = @transform_2, window_bounds = array<i64: 3, 128, 128>}, {pipeline_mode = #tpu.pipeline_mode<synchronous>, transform_indices = @transform_3, window_bounds = array<i64: 1, 128>}, {pipeline_mode = #tpu.pipeline_mode<synchronous>, transform_indices = @transform_4, window_bounds = array<i64: 3, 128, 128>}, {transform_indices = @transform_5, window_bounds = array<i64: 1, 16, 128>}]} {
    %c0 = arith.constant 0 : index
    %c0_0 = arith.constant 0 : index
    %c0_1 = arith.constant 0 : index
    %0 = vector.load %arg1[%c0, %c0_0, %c0_1] : memref<1x16x64xf32, #tpu.memory_space<vmem>>, vector<1x16x64xf32>
    %1 = vector.shape_cast %0 : vector<1x16x64xf32> to vector<16x64xf32>
    %2 = tpu.iota {dimensions = array<i32: 0>} : vector<16x128xi32>
    %c16_i32 = arith.constant 16 : i32
    %c0_i32 = arith.constant 0 : i32
    %3 = arith.cmpi eq, %c16_i32, %c0_i32 : i32
    %c1_i32 = arith.constant 1 : i32
    %4 = arith.select %3, %c1_i32, %c16_i32 : i32
    %5 = vector.broadcast %4 : i32 to vector<16x128xi32>
    %6 = arith.remsi %2, %5 : vector<16x128xi32>
    %c0_i32_2 = arith.constant 0 : i32
    %7 = vector.broadcast %c0_i32_2 : i32 to vector<16x128xi32>
    %8 = arith.cmpi ne, %6, %7 : vector<16x128xi32>
    %c0_i32_3 = arith.constant 0 : i32
    %9 = vector.broadcast %c0_i32_3 : i32 to vector<16x128xi32>
    %10 = arith.cmpi slt, %6, %9 : vector<16x128xi32>
    %c0_i32_4 = arith.constant 0 : i32
    %11 = arith.cmpi slt, %4, %c0_i32_4 : i32
    %12 = vector.broadcast %11 : i1 to vector<16x128xi1>
    %13 = vector.broadcast %12 : vector<16x128xi1> to vector<16x128xi1>
    %14 = arith.xori %10, %13 : vector<16x128xi1>
    %15 = arith.andi %14, %8 : vector<16x128xi1>
    %16 = vector.broadcast %4 : i32 to vector<16x128xi32>
    %17 = arith.addi %6, %16 : vector<16x128xi32>
    %18 = arith.select %15, %17, %6 : vector<16x128xi1>, vector<16x128xi32>
    %c0_5 = arith.constant 0 : index
    %c0_6 = arith.constant 0 : index
    %19 = vector.load %arg2[%c0_5, %c0_6] : memref<64x128xf32, #tpu.memory_space<vmem>>, vector<64x128xf32>
    %cst = arith.constant dense<0.000000e+00> : vector<16x128xf32>
    %20 = tpu.matmul %1, %19, %cst {dimension_numbers = #tpu.dot_dimension_numbers<[1], [0], [0], [1], [0, 0, 1, 1], [], []>} : vector<16x64xf32>, vector<64x128xf32>, vector<16x128xf32> -> vector<16x128xf32>
    %c1_i32_7 = arith.constant 1 : i32
    %21 = tpu.dynamic_rotate %20 by %c1_i32_7 dim 0 : vector<16x128xf32>, i32 -> vector<16x128xf32>
    %c1_i32_8 = arith.constant 1 : i32
    %22 = vector.broadcast %c1_i32_8 : i32 to vector<16x128xi32>
    %23 = arith.cmpi sge, %18, %22 : vector<16x128xi32>
    %cst_9 = arith.constant 0.000000e+00 : f32
    %24 = vector.broadcast %cst_9 : f32 to vector<16x128xf32>
    %25 = arith.select %23, %21, %24 : vector<16x128xi1>, vector<16x128xf32>
    %c0_10 = arith.constant 0 : index
    %c0_11 = arith.constant 0 : index
    %c0_12 = arith.constant 0 : index
    %26 = vector.load %arg3[%c0_10, %c0_11, %c0_12] : memref<3x128x128xf32, #tpu.memory_space<vmem>>, vector<1x128x128xf32>
    %27 = vector.shape_cast %26 : vector<1x128x128xf32> to vector<128x128xf32>
    %cst_13 = arith.constant dense<0.000000e+00> : vector<16x128xf32>
    %28 = tpu.matmul %25, %27, %cst_13 {dimension_numbers = #tpu.dot_dimension_numbers<[1], [0], [0], [1], [0, 0, 1, 1], [], []>} : vector<16x128xf32>, vector<128x128xf32>, vector<16x128xf32> -> vector<16x128xf32>
    %c1 = arith.constant 1 : index
    %c0_14 = arith.constant 0 : index
    %c0_15 = arith.constant 0 : index
    %29 = vector.load %arg3[%c1, %c0_14, %c0_15] : memref<3x128x128xf32, #tpu.memory_space<vmem>>, vector<1x128x128xf32>
    %30 = vector.shape_cast %29 : vector<1x128x128xf32> to vector<128x128xf32>
    %cst_16 = arith.constant dense<0.000000e+00> : vector<16x128xf32>
    %31 = tpu.matmul %20, %30, %cst_16 {dimension_numbers = #tpu.dot_dimension_numbers<[1], [0], [0], [1], [0, 0, 1, 1], [], []>} : vector<16x128xf32>, vector<128x128xf32>, vector<16x128xf32> -> vector<16x128xf32>
    %32 = arith.addf %28, %31 : vector<16x128xf32>
    %c15_i32 = arith.constant 15 : i32
    %33 = tpu.dynamic_rotate %20 by %c15_i32 dim 0 : vector<16x128xf32>, i32 -> vector<16x128xf32>
    %c15_i32_17 = arith.constant 15 : i32
    %34 = vector.broadcast %c15_i32_17 : i32 to vector<16x128xi32>
    %35 = arith.cmpi slt, %18, %34 : vector<16x128xi32>
    %cst_18 = arith.constant 0.000000e+00 : f32
    %36 = vector.broadcast %cst_18 : f32 to vector<16x128xf32>
    %37 = arith.select %35, %33, %36 : vector<16x128xi1>, vector<16x128xf32>
    %c2 = arith.constant 2 : index
    %c0_19 = arith.constant 0 : index
    %c0_20 = arith.constant 0 : index
    %38 = vector.load %arg3[%c2, %c0_19, %c0_20] : memref<3x128x128xf32, #tpu.memory_space<vmem>>, vector<1x128x128xf32>
    %39 = vector.shape_cast %38 : vector<1x128x128xf32> to vector<128x128xf32>
    %cst_21 = arith.constant dense<0.000000e+00> : vector<16x128xf32>
    %40 = tpu.matmul %37, %39, %cst_21 {dimension_numbers = #tpu.dot_dimension_numbers<[1], [0], [0], [1], [0, 0, 1, 1], [], []>} : vector<16x128xf32>, vector<128x128xf32>, vector<16x128xf32> -> vector<16x128xf32>
    %41 = arith.addf %32, %40 : vector<16x128xf32>
    %c0_22 = arith.constant 0 : index
    %c0_23 = arith.constant 0 : index
    %42 = vector.load %arg4[%c0_22, %c0_23] : memref<1x128xf32, #tpu.memory_space<vmem>>, vector<1x128xf32>
    %43 = vector.broadcast %42 : vector<1x128xf32> to vector<16x128xf32>
    %44 = arith.addf %41, %43 : vector<16x128xf32>
    %cst_24 = arith.constant 0.000000e+00 : f32
    %45 = vector.broadcast %cst_24 : f32 to vector<16x128xf32>
    %46 = arith.maximumf %44, %45 : vector<16x128xf32>
    %c1_i32_25 = arith.constant 1 : i32
    %47 = tpu.dynamic_rotate %46 by %c1_i32_25 dim 0 : vector<16x128xf32>, i32 -> vector<16x128xf32>
    %c1_i32_26 = arith.constant 1 : i32
    %48 = vector.broadcast %c1_i32_26 : i32 to vector<16x128xi32>
    %49 = arith.cmpi sge, %18, %48 : vector<16x128xi32>
    %cst_27 = arith.constant 0.000000e+00 : f32
    %50 = vector.broadcast %cst_27 : f32 to vector<16x128xf32>
    %51 = arith.select %49, %47, %50 : vector<16x128xi1>, vector<16x128xf32>
    %c0_28 = arith.constant 0 : index
    %c0_29 = arith.constant 0 : index
    %c0_30 = arith.constant 0 : index
    %52 = vector.load %arg5[%c0_28, %c0_29, %c0_30] : memref<3x128x128xf32, #tpu.memory_space<vmem>>, vector<1x128x128xf32>
    %53 = vector.shape_cast %52 : vector<1x128x128xf32> to vector<128x128xf32>
    %cst_31 = arith.constant dense<0.000000e+00> : vector<16x128xf32>
    %54 = tpu.matmul %51, %53, %cst_31 {dimension_numbers = #tpu.dot_dimension_numbers<[1], [0], [0], [1], [0, 0, 1, 1], [], []>} : vector<16x128xf32>, vector<128x128xf32>, vector<16x128xf32> -> vector<16x128xf32>
    %c1_32 = arith.constant 1 : index
    %c0_33 = arith.constant 0 : index
    %c0_34 = arith.constant 0 : index
    %55 = vector.load %arg5[%c1_32, %c0_33, %c0_34] : memref<3x128x128xf32, #tpu.memory_space<vmem>>, vector<1x128x128xf32>
    %56 = vector.shape_cast %55 : vector<1x128x128xf32> to vector<128x128xf32>
    %cst_35 = arith.constant dense<0.000000e+00> : vector<16x128xf32>
    %57 = tpu.matmul %46, %56, %cst_35 {dimension_numbers = #tpu.dot_dimension_numbers<[1], [0], [0], [1], [0, 0, 1, 1], [], []>} : vector<16x128xf32>, vector<128x128xf32>, vector<16x128xf32> -> vector<16x128xf32>
    %58 = arith.addf %54, %57 : vector<16x128xf32>
    %c15_i32_36 = arith.constant 15 : i32
    %59 = tpu.dynamic_rotate %46 by %c15_i32_36 dim 0 : vector<16x128xf32>, i32 -> vector<16x128xf32>
    %c15_i32_37 = arith.constant 15 : i32
    %60 = vector.broadcast %c15_i32_37 : i32 to vector<16x128xi32>
    %61 = arith.cmpi slt, %18, %60 : vector<16x128xi32>
    %cst_38 = arith.constant 0.000000e+00 : f32
    %62 = vector.broadcast %cst_38 : f32 to vector<16x128xf32>
    %63 = arith.select %61, %59, %62 : vector<16x128xi1>, vector<16x128xf32>
    %c2_39 = arith.constant 2 : index
    %c0_40 = arith.constant 0 : index
    %c0_41 = arith.constant 0 : index
    %64 = vector.load %arg5[%c2_39, %c0_40, %c0_41] : memref<3x128x128xf32, #tpu.memory_space<vmem>>, vector<1x128x128xf32>
    %65 = vector.shape_cast %64 : vector<1x128x128xf32> to vector<128x128xf32>
    %cst_42 = arith.constant dense<0.000000e+00> : vector<16x128xf32>
    %66 = tpu.matmul %63, %65, %cst_42 {dimension_numbers = #tpu.dot_dimension_numbers<[1], [0], [0], [1], [0, 0, 1, 1], [], []>} : vector<16x128xf32>, vector<128x128xf32>, vector<16x128xf32> -> vector<16x128xf32>
    %67 = arith.addf %58, %66 : vector<16x128xf32>
    %68 = arith.addf %67, %20 : vector<16x128xf32>
    %69 = vector.shape_cast %68 : vector<16x128xf32> to vector<1x16x128xf32>
    %c0_43 = arith.constant 0 : index
    %c0_44 = arith.constant 0 : index
    %c0_45 = arith.constant 0 : index
    %70 = vector.load %arg6[%c0_43, %c0_44, %c0_45] : memref<1x16x128xf32, #tpu.memory_space<vmem>>, vector<1x16x128xf32>
    tpu.vector_store %arg6[%c0_43, %c0_44, %c0_45], %69 {strides = array<i32>} : memref<1x16x128xf32, #tpu.memory_space<vmem>>, vector<1x16x128xf32>,
    return
  }
  func.func @transform_0(%arg0: i32) -> (i32, i32, i32) {
    %c0_i32 = arith.constant 0 : i32
    %c0_i32_0 = arith.constant 0 : i32
    %c0_i32_1 = arith.constant 0 : i32
    return %arg0, %c0_i32, %c0_i32_0 : i32, i32, i32
  }
  func.func @transform_1(%arg0: i32) -> (i32, i32) {
    %c0_i32 = arith.constant 0 : i32
    %c0_i32_0 = arith.constant 0 : i32
    %c0_i32_1 = arith.constant 0 : i32
    return %c0_i32, %c0_i32_0 : i32, i32
  }
  func.func @transform_2(%arg0: i32) -> (i32, i32, i32) {
    %c0_i32 = arith.constant 0 : i32
    %c0_i32_0 = arith.constant 0 : i32
    %c0_i32_1 = arith.constant 0 : i32
    %c0_i32_2 = arith.constant 0 : i32
    return %c0_i32, %c0_i32_0, %c0_i32_1 : i32, i32, i32
  }
  func.func @transform_3(%arg0: i32) -> (i32, i32) {
    %c0_i32 = arith.constant 0 : i32
    %c0_i32_0 = arith.constant 0 : i32
    %c0_i32_1 = arith.constant 0 : i32
    return %c0_i32, %c0_i32_0 : i32, i32
  }
  func.func @transform_4(%arg0: i32) -> (i32, i32, i32) {
    %c0_i32 = arith.constant 0 : i32
    %c0_i32_0 = arith.constant 0 : i32
    %c0_i32_1 = arith.constant 0 : i32
    %c0_i32_2 = arith.constant 0 : i32
    return %c0_i32, %c0_i32_0, %c0_i32_1 : i32, i32, i32
  }
  func.func @transform_5(%arg0: i32) -> (i32, i32, i32) {
    %c0_i32 = arith.constant 0 : i32
    %c0_i32_0 = arith.constant 0 : i32
    %c0_i32_1 = arith.constant 0 : i32
    return %arg0, %c0_i32, %c0_i32_0 : i32, i32, i32
  }
}

</mosaic_0001>

<bundles_post_ra>
// kernel: refine_residual.1
= control target key start
LH: loop header
LB: loop body
LE: loop exit
PB: predicated region body
PF: predicated region fallthrough
CT: control target
= control target key end

     0   :  { %10 = vsyncpa [#allocation3], 0  ;;  %s2115_s0 = inlined_call_operand.vmem [shape: f32[2,16,64], index: 0, kind: input, shape index: {}]   ;;  %s2116_s1 = inlined_call_operand.hbm [shape: f32[64,128], index: 1, kind: input, shape index: {}]   ;;  %s2117_s2 = inlined_call_operand.vmem [shape: f32[3,128,128], index: 2, kind: input, shape index: {}]   ;;  %s2118_s3 = inlined_call_operand.vmem [shape: f32[1,128], index: 3, kind: input, shape index: {}]   ;;  %s2119_s4 = inlined_call_operand.hbm [shape: f32[3,128,128], index: 4, kind: input, shape index: {}]   ;;  %s2120_s5 = inlined_call_operand.vmem [shape: f32[2,16,128], index: 5, kind: output, shape index: {}]  }
   0x1   :  { %11 = vsyncpa [#allocation5], 0  ;;  %s1806_s18 = smov 0  }
   0x2 LB: > { %s1812_s19 = sadd.s32 4294967295, %s1770_s18   ;;  %p1052_p0 = scmp.ge.s32.totalorder %s1770_s18, 1  ;;  %s1770_s18 = sphi %s1806_s18, %s17_s18  }
   0x3   : > { %p158_p1 = scmp.lt.s32.totalorder %s1770_s18, 3  ;;  %s1772_s20 = smov [#allocation2]  }
   0x4   : > { %s170_s21 = sshll.u32 %s1772_s20, 4  ;;  %p2121_p3 = scmp.eq.s32.totalorder %s1812_s19, 0  ;;  %s171_s21 = int_to_ptr.vmem [resolvable:$true] %s170_s21 }
   0x5   : > { %p1816_p2 = pnand %p1052_p0, %p158_p1  ;;  %s1773_s23 = smov [#allocation4]  }
   0x6   : > { %s189_s24 = sshll.u32 %s1773_s23, 4  ;;  %s1700_s28 = scalar_lea.hbm %s2116_s1, 1024  ;;  %s1829_s24 = int_to_ptr.vmem [resolvable:$true] %s189_s24 }
   0x7   : > { %s2123_s22 = scalar_select %p1816_p2, 1, 0 }
   0x8   : > { %p1677_p4 = pneg %p1816_p2  ;;  %p1701_p6 = scmp.ne.s32.totalorder %s2116_s1, %s1700_s28 }
   0x9   : > { %p1707_p10 = scmp.lt.u32.totalorder %s1700_s28, %s2116_s1 }
   0xa   : > { %p1825_p5 = pnand %p2121_p3, %p1677_p4 }
   0xc   : > { %p1702_p7 = pneg %p1825_p5 }
   0xe   : > { %p1703_p8 = pnand %p1702_p7, %p1701_p6 }
  0x10   : > { %p1704_p9 = pneg %p1703_p8 }
  0x12   : > { %p1709_p11 = pnand %p1707_p10, %p1704_p9 }
  0x14   : > { %1712 = shalt.err (!%p1709_p11)
}
  0x15   : > { %s1713_s8 = scalar_lea.vmem %s171_s21, 1024  ;;  %p1721_p1 = scmp.lt.s32.totalorder %s171_s21, %s171_s21 }
  0x16   : > { %p1714_p12 = scmp.ne.s32.totalorder %s171_s21, %s1713_s8  ;;  %p1722_p4 = scmp.lt.s32.totalorder %s1713_s8, %s1713_s8 }
  0x18   : > { %p1716_p13 = pnand %p1714_p12, %p1702_p7  ;;  %p1723_p3 = por %p1722_p4, %p1721_p1 }
  0x1a   : > { %p1717_p0 = pneg %p1716_p13 }
  0x1c   : > { %p1724_p2 = pnand %p1723_p3, %p1717_p0 }
  0x1e   : > { %1727 = shalt.err (!%p1724_p2)
}
  0x1f   : > { %s1774_s9 = smov 128   ;;  %s1775_s10 = smov 8  }
  0x20   : > { %1680 = dma.hbm_to_vmem [thread:$0]  (!%p1825_p5), %s2116_s1, 1024, %s171_s21, [#allocation3], %s1774_s9, %s1774_s9, %s1775_s10  }
  0x21   : > { %s1728_s15 = scalar_lea.hbm %s2119_s4, 6144 }
  0x22   : > { %p1729_p6 = scmp.ne.s32.totalorder %s2119_s4, %s1728_s15  ;;  %p1735_p8 = scmp.lt.u32.totalorder %s1728_s15, %s2119_s4 }
  0x24   : > { %p1731_p2 = pnand %p1729_p6, %p1702_p7 }
  0x26   : > { %p1732_p3 = pneg %p1731_p2 }
  0x28   : > { %p1737_p9 = pnand %p1735_p8, %p1732_p3 }
  0x2a   : > { %1740 = shalt.err (!%p1737_p9)
}
  0x2b   : > { %s1741_s21 = scalar_lea.vmem %s1829_s24, 6144  ;;  %p1749_p13 = scmp.lt.s32.totalorder %s1829_s24, %s1829_s24 }
  0x2c   : > { %p1742_p10 = scmp.ne.s32.totalorder %s1829_s24, %s1741_s21  ;;  %p1750_p0 = scmp.lt.s32.totalorder %s1741_s21, %s1741_s21 }
  0x2e   : > { %p1744_p11 = pnand %p1742_p10, %p1702_p7  ;;  %p1751_p1 = por %p1750_p0, %p1749_p13 }
  0x30   : > { %p1745_p12 = pneg %p1744_p11 }
  0x32   : > { %p1752_p4 = pnand %p1751_p1, %p1745_p12 }
  0x34   : > { %1755 = shalt.err (!%p1752_p4)
}
  0x35   : > { %1683 = dma.hbm_to_vmem [thread:$0]  (!%p1825_p5), %s2119_s4, 6144, %s1829_s24, [#allocation5], %s1774_s9, %s1774_s9, %s1775_s10  }
  0x36   : > { %p2125_p6 = scmp.ne.s32.totalorder %s2123_s22, 0 }
  0x37   : > { %p2126_p2 = scmp.eq.s32.totalorder (!%p2125_p6), %s1812_s19, 0 }
  0x38   : > { %213 = sbr.rel (%p2125_p6) target bundleno = 862 (0x35e), region = 40 }
  0x3f   : > { %1761 = dma.done.wait (%p2126_p2), [#allocation3], 1024   ;;  %p2127_p7 = pmov %p2126_p2 }
  0x40   : > { %p2128_p3 = pmov %p2126_p2 }
  0x41   : > { %1763 = vsyncadd (%p2127_p7), [#allocation3], 4294966272 }
  0x42   : > { %1765 = dma.done.wait (%p2128_p3), [#allocation5], 6144   ;;  %p2129_p8 = pmov %p2126_p2 }
  0x43   : > { %p245_p9 = scmp.lt.s32.totalorder %s1812_s19, 1  ;;  %v284_v0 = vld [vmem:[#allocation2] sm:$0xff]  ;;  %v285_v1 = vld [vmem:[#allocation2 + $0x8] sm:$0xff]  ;;  %v286_v2 = vld [vmem:[#allocation2 + $0x10] sm:$0xff]  ;;  %vm292_vm0 = vcmask 523264   ;;  %v257_v62 = vlaneseq }
  0x44   : > { %1767 = vsyncadd (%p2129_p8), [#allocation5], 4294961152  ;;  %v1453_v3 = vpack.c.bf16 %v285_v1, %v284_v0  ;;  %v287_v4 = vld [vmem:[#allocation2 + $0x18] sm:$0xff]  ;;  %v288_v6 = vld [vmem:[#allocation2 + $0x20] sm:$0xff] }
  0x45   : > { %s2135_s19 = smov (!%p245_p9, %s1812_s19), 1  ;;  %v1457_v5 = vpack.c.bf16 %v287_v4, %v286_v2  ;;  %v289_v7 = vld [vmem:[#allocation2 + $0x28] sm:$0xff]  ;;  %v1065_v9 = vld [vmem:[%s2117_s2 + $0x80] sm:$0xff]  ;;  %v1067_v12 = vld [vmem:[%s2117_s2 + $0x90] sm:$0xff]  ;;  %v1958_v63 = vshrl.u32 %v257_v62, 7 }
  0x46   : > { %s1104_s22 = sshll.u32 %s2135_s19, 4  ;;  %1454 = vmatprep.subr.bf16.mxu0 %v1453_v3  ;;  %v1066_v10 = vld [vmem:[%s2117_s2 + $0x88] sm:$0xff]  ;;  %v1068_v13 = vld [vmem:[%s2117_s2 + $0x98] sm:$0xff]  ;;  %v1461_v14 = vpack.c.bf16 %v289_v7, %v288_v6  ;;  %v1069_v16 = vld [vmem:[%s2117_s2 + $0xa0] sm:$0xff] }
  0x47   : > { %s1898_s28 = scalar_lea.vmem %s2115_s0, %s1104_s22  ;;  %1456 = vmatpush3.bf16.msra.mxu0 %v1453_v3  ;;  %v1469_v11 = vpack.c.bf16 %v1066_v10, %v1065_v9  ;;  %v1473_v15 = vpack.c.bf16 %v1068_v13, %v1067_v12  ;;  %v1070_v17 = vld [vmem:[%s2117_s2 + $0xa8] sm:$0xff]  ;;  %v290_v18 = vld [vmem:[#allocation2 + $0x30] sm:$0xff]  ;;  %v291_v19 = vld [vmem:[#allocation2 + $0x38] sm:$0xff]  ;;  %v264_v0 = vand.u32 15, %v1958_v63  ;;  %vm376_vm1 = vcmp.lt.s32.totalorder %v1958_v63, 1  ;;  %s254_s16 = scalar_lea.vmem %s2120_s5, %s1104_s22 }
  0x48   : > { %v255_v8 = vld [vmem:[%s1898_s28] sm:$0xff]  ;;  %1458 = vmatprep.subr.bf16.mxu0 %v1457_v5  ;;  %v1477_v20 = vpack.c.bf16 %v1070_v17, %v1069_v16  ;;  %v1465_v21 = vpack.c.bf16 %v291_v19, %v290_v18  ;;  %v1071_v22 = vld [vmem:[%s2117_s2 + $0xb0] sm:$0xff]  ;;  %v1072_v23 = vld [vmem:[%s2117_s2 + $0xb8] sm:$0xff]  ;;  %vm568_vm2 = vcmp.lt.s32.totalorder %v1958_v63, 7 }
  0x49   : > { %1240 = vmatprep.mubr.msk.f32.mxu0 %vm292_vm0, %v255_v8  ;;  %1470 = vmatprep.subr.bf16.mxu1 %v1469_v11  ;;  %v1481_v24 = vpack.c.bf16 %v1072_v23, %v1071_v22  ;;  %v1073_v25 = vld [vmem:[%s2117_s2 + $0xc0] sm:$0xff]  ;;  %v1074_v26 = vld [vmem:[%s2117_s2 + $0xc8] sm:$0xff]  ;;  %v1075_v29 = vld [vmem:[%s2117_s2 + $0xd0] sm:$0xff]  ;;  %vm1978_vm3 = vcmp.ge.s32.totalorder %v264_v0, 1 }
  0x4a   : > { %1472 = vmatpush3.bf16.msra.mxu1 %v1469_v11  ;;  %v256_v27 = vld [vmem:[%s1898_s28 + $0x8] sm:$0xff]  ;;  %v1485_v28 = vpack.c.bf16 %v1074_v26, %v1073_v25  ;;  %v1076_v30 = vld [vmem:[%s2117_s2 + $0xd8] sm:$0xff]  ;;  %v1077_v32 = vld [vmem:[%s2117_s2 + $0xe0] sm:$0xff] }
  0x4b   : > { %1460 = vmatpush3.bf16.msra.mxu0 %v1457_v5  ;;  %1474 = vmatprep.subr.bf16.mxu1 %v1473_v15  ;;  %v1489_v31 = vpack.c.bf16 %v1076_v30, %v1075_v29  ;;  %v1078_v33 = vld [vmem:[%s2117_s2 + $0xe8] sm:$0xff]  ;;  %v1079_v35 = vld [vmem:[%s2117_s2 + $0xf0] sm:$0xff]  ;;  %v1080_v36 = vld [vmem:[%s2117_s2 + $0xf8] sm:$0xff] }
  0x4c   : > { %1462 = vmatprep.subr.bf16.mxu0 %v1461_v14  ;;  %v1493_v34 = vpack.c.bf16 %v1078_v33, %v1077_v32  ;;  %v1497_v37 = vpack.c.bf16 %v1080_v36, %v1079_v35  ;;  %v383_v38 = vld [vmem:[%s2117_s2] sm:$0xff]  ;;  %v384_v39 = vld [vmem:[%s2117_s2 + $0x8] sm:$0xff]  ;;  %v705_v43 = vld [vmem:[#allocation4 + $0x90] sm:$0xff] }
  0x4d   : > { %v1501_v40 = vpack.c.bf16 %v384_v39, %v383_v38  ;;  %v703_v41 = vld [vmem:[#allocation4 + $0x80] sm:$0xff]  ;;  %v704_v42 = vld [vmem:[#allocation4 + $0x88] sm:$0xff]  ;;  %v706_v45 = vld [vmem:[#allocation4 + $0x98] sm:$0xff] }
  0x4e   : > { %1476 = vmatpush3.bf16.msra.mxu1 %v1473_v15  ;;  %v1565_v44 = vpack.c.bf16 %v704_v42, %v703_v41  ;;  %v1569_v46 = vpack.c.bf16 %v706_v45, %v705_v43  ;;  %v707_v47 = vld [vmem:[#allocation4 + $0xa0] sm:$0xff]  ;;  %v708_v48 = vld [vmem:[#allocation4 + $0xa8] sm:$0xff]  ;;  %v709_v50 = vld [vmem:[#allocation4 + $0xb0] sm:$0xff] }
  0x4f   : > { %1464 = vmatpush3.bf16.msra.mxu0 %v1461_v14  ;;  %1478 = vmatprep.subr.bf16.mxu1 %v1477_v20  ;;  %v1573_v49 = vpack.c.bf16 %v708_v48, %v707_v47  ;;  %v710_v51 = vld [vmem:[#allocation4 + $0xb8] sm:$0xff]  ;;  %v711_v53 = vld [vmem:[#allocation4 + $0xc0] sm:$0xff]  ;;  %v712_v54 = vld [vmem:[#allocation4 + $0xc8] sm:$0xff] }
  0x50   : > { %1466 = vmatprep.subr.bf16.mxu0 %v1465_v21  ;;  %v1577_v52 = vpack.c.bf16 %v710_v51, %v709_v50  ;;  %v1581_v55 = vpack.c.bf16 %v712_v54, %v711_v53  ;;  %v713_v56 = vld [vmem:[#allocation4 + $0xd0] sm:$0xff]  ;;  %v714_v57 = vld [vmem:[#allocation4 + $0xd8] sm:$0xff]  ;;  %v715_v59 = vld [vmem:[#allocation4 + $0xe0] sm:$0xff] }
  0x51   : > { %v1585_v58 = vpack.c.bf16 %v714_v57, %v713_v56  ;;  %v716_v60 = vld [vmem:[#allocation4 + $0xe8] sm:$0xff]  ;;  %v385_v1 = vld [vmem:[%s2117_s2 + $0x10] sm:$0xff]  ;;  %v386_v2 = vld [vmem:[%s2117_s2 + $0x18] sm:$0xff]  ;;  %v259_v56 = vadd.s32 8, %v1958_v63 }
  0x52   : > { %1480 = vmatpush3.bf16.msra.mxu1 %v1477_v20  ;;  %v1589_v61 = vpack.c.bf16 %v716_v60, %v715_v59  ;;  %v1505_v7 = vpack.c.bf16 %v386_v2, %v385_v1  ;;  %v387_v11 = vld [vmem:[%s2117_s2 + $0x20] sm:$0xff]  ;;  %v388_v12 = vld [vmem:[%s2117_s2 + $0x28] sm:$0xff]  ;;  %v389_v18 = vld [vmem:[%s2117_s2 + $0x30] sm:$0xff] }
  0x53   : > { %1468 = vmatpush3.bf16.msra.mxu0 %v1465_v21  ;;  %1482 = vmatprep.subr.bf16.mxu1 %v1481_v24  ;;  %v1509_v17 = vpack.c.bf16 %v388_v12, %v387_v11  ;;  %v390_v19 = vld [vmem:[%s2117_s2 + $0x38] sm:$0xff]  ;;  %v391_v21 = vld [vmem:[%s2117_s2 + $0x40] sm:$0xff]  ;;  %v392_v22 = vld [vmem:[%s2117_s2 + $0x48] sm:$0xff] }
  0x54   : > { %1566 = vmatprep.subr.bf16.mxu0 %v1565_v44  ;;  %v1513_v20 = vpack.c.bf16 %v390_v19, %v389_v18  ;;  %v1517_v23 = vpack.c.bf16 %v392_v22, %v391_v21  ;;  %v394_v25 = vld [vmem:[%s2117_s2 + $0x58] sm:$0xff]  ;;  %v397_v30 = vld [vmem:[%s2117_s2 + $0x70] sm:$0xff]  ;;  %v1082_v33 = vld [vmem:[%s2117_s2 + $0x100] sm:$0xff] }
  0x55   : > { %v1084_v36 = vld [vmem:[%s2117_s2 + $0x110] sm:$0xff]  ;;  %v1086_v39 = vld [vmem:[%s2117_s2 + $0x120] sm:$0xff]  ;;  %v1089_v43 = vld [vmem:[%s2117_s2 + $0x138] sm:$0xff] }
  0x56   : > { %1241 = vmatmul.mubr.msk.f32.vlgmr.msra.gmra.mrb[0].mxu0 %vm292_vm0, %v256_v27  ;;  %1484 = vmatpush3.bf16.msra.mxu1 %v1481_v24  ;;  %v393_v24 = vld [vmem:[%s2117_s2 + $0x50] sm:$0xff]  ;;  %v395_v27 = vld [vmem:[%s2117_s2 + $0x60] sm:$0xff]  ;;  %v687_v1 = vld [vmem:[#allocation4 + $0x8] sm:$0xff] }
  0x57   : > { %1486 = vmatprep.subr.bf16.mxu1 %v1485_v28  ;;  %1568 = vmatpush3.bf16.msra.mxu0 %v1565_v44  ;;  %v1521_v26 = vpack.c.bf16 %v394_v25, %v393_v24  ;;  %v1088_v42 = vld [vmem:[%s2117_s2 + $0x130] sm:$0xff]  ;;  %v1090_v45 = vld [vmem:[%s2117_s2 + $0x140] sm:$0xff]  ;;  %v689_v12 = vld [vmem:[#allocation4 + $0x18] sm:$0xff] }
  0x58   : > { %1570 = vmatprep.subr.bf16.mxu0 %v1569_v46  ;;  %v1545_v44 = vpack.c.bf16 %v1089_v43, %v1088_v42  ;;  %v1092_v48 = vld [vmem:[%s2117_s2 + $0x150] sm:$0xff]  ;;  %v1094_v51 = vld [vmem:[%s2117_s2 + $0x160] sm:$0xff]  ;;  %v691_v21 = vld [vmem:[#allocation4 + $0x28] sm:$0xff] }
  0x59   : > { %v1096_v54 = vld [vmem:[%s2117_s2 + $0x170] sm:$0xff]  ;;  %v686_v0 = vld [vmem:[#allocation4] sm:$0xff]  ;;  %v699_v10 = vld [vmem:[#allocation4 + $0x68] sm:$0xff] }
  0x5a   : > { %1488 = vmatpush3.bf16.msra.mxu1 %v1485_v28  ;;  %v396_v28 = vld [vmem:[%s2117_s2 + $0x68] sm:$0xff]  ;;  %v717_v60 = vld [vmem:[#allocation4 + $0xf0] sm:$0xff]  ;;  %v1597_v2 = vpack.c.bf16 %v687_v1, %v686_v0  ;;  %v891_v0 = vld [vmem:[#allocation4 + $0x178] sm:$0xff] }
  0x5b   : > { %1490 = vmatprep.subr.bf16.mxu1 %v1489_v31  ;;  %1572 = vmatpush3.bf16.msra.mxu0 %v1569_v46  ;;  %v1525_v29 = vpack.c.bf16 %v396_v28, %v395_v27  ;;  %v1091_v46 = vld [vmem:[%s2117_s2 + $0x148] sm:$0xff]  ;;  %v688_v11 = vld [vmem:[#allocation4 + $0x10] sm:$0xff]  ;;  %v693_v28 = vld [vmem:[#allocation4 + $0x38] sm:$0xff] }
  0x5c   : > { %1574 = vmatprep.subr.bf16.mxu0 %v1573_v49  ;;  %v1549_v47 = vpack.c.bf16 %v1091_v46, %v1090_v45  ;;  %v692_v27 = vld [vmem:[#allocation4 + $0x30] sm:$0xff]  ;;  %v880_v46 = vld [vmem:[#allocation4 + $0x120] sm:$0xff] }
  0x5d   : > { %v878_v43 = vld [vmem:[#allocation4 + $0x110] sm:$0xff] }
  0x5e   : > { %1492 = vmatpush3.bf16.msra.mxu1 %v1489_v31  ;;  %v398_v31 = vld [vmem:[%s2117_s2 + $0x78] sm:$0xff] }
  0x5f   : > { %1494 = vmatprep.subr.bf16.mxu1 %v1493_v34  ;;  %1576 = vmatpush3.bf16.msra.mxu0 %v1573_v49  ;;  %v1529_v32 = vpack.c.bf16 %v398_v31, %v397_v30  ;;  %v1093_v49 = vld [vmem:[%s2117_s2 + $0x158] sm:$0xff]  ;;  %v694_v30 = vld [vmem:[#allocation4 + $0x40] sm:$0xff]  ;;  %v695_v31 = vld [vmem:[#allocation4 + $0x48] sm:$0xff] }
  0x60   : > { %1578 = vmatprep.subr.bf16.mxu0 %v1577_v52  ;;  %v1553_v50 = vpack.c.bf16 %v1093_v49, %v1092_v48  ;;  %v882_v49 = vld [vmem:[#allocation4 + $0x130] sm:$0xff] }
  0x62   : > { %1496 = vmatpush3.bf16.msra.mxu1 %v1493_v34  ;;  %v1083_v34 = vld [vmem:[%s2117_s2 + $0x108] sm:$0xff] }
  0x63   : > { %1498 = vmatprep.subr.bf16.mxu1 %v1497_v37  ;;  %1580 = vmatpush3.bf16.msra.mxu0 %v1577_v52  ;;  %v1533_v35 = vpack.c.bf16 %v1083_v34, %v1082_v33  ;;  %v1095_v52 = vld [vmem:[%s2117_s2 + $0x168] sm:$0xff]  ;;  %v696_v33 = vld [vmem:[#allocation4 + $0x50] sm:$0xff]  ;;  %v697_v34 = vld [vmem:[#allocation4 + $0x58] sm:$0xff] }
  0x64   : > { %1582 = vmatprep.subr.bf16.mxu0 %v1581_v55  ;;  %v1557_v53 = vpack.c.bf16 %v1095_v52, %v1094_v51  ;;  %v1617_v63 = vpack.c.bf16 %v697_v34, %v696_v33  ;;  %v884_v52 = vld [vmem:[#allocation4 + $0x140] sm:$0xff] }
  0x66   : > { %1500 = vmatpush3.bf16.msra.mxu1 %v1497_v37  ;;  %v1085_v37 = vld [vmem:[%s2117_s2 + $0x118] sm:$0xff] }
  0x67   : > { %1502 = vmatprep.subr.bf16.mxu1 %v1501_v40  ;;  %1584 = vmatpush3.bf16.msra.mxu0 %v1581_v55  ;;  %v1537_v38 = vpack.c.bf16 %v1085_v37, %v1084_v36  ;;  %v1097_v55 = vld [vmem:[%s2117_s2 + $0x178] sm:$0xff]  ;;  %v700_v37 = vld [vmem:[#allocation4 + $0x70] sm:$0xff] }
  0x68   : > { %1586 = vmatprep.subr.bf16.mxu0 %v1585_v58  ;;  %v1561_v57 = vpack.c.bf16 %v1097_v55, %v1096_v54  ;;  %v886_v55 = vld [vmem:[#allocation4 + $0x150] sm:$0xff] }
  0x6b   : > { %1588 = vmatpush3.bf16.msra.mxu0 %v1585_v58  ;;  %v271_v58 = vand.u32 15, %v259_v56  ;;  %v887_v56 = vld [vmem:[#allocation4 + $0x158] sm:$0xff] }
  0x6c   : > { %1590 = vmatprep.subr.bf16.mxu0 %v1589_v61 }
  0x6d   : > { %vm2080_vm4 = vcmp.lt.s32.totalorder %v271_v58, 15  ;;  %v888_v58 = vld [vmem:[#allocation4 + $0x160] sm:$0xff] }
  0x6f   : > { %1592 = vmatpush3.bf16.msra.mxu0 %v1589_v61  ;;  %v718_v61 = vld [vmem:[#allocation4 + $0xf8] sm:$0xff] }
  0x70   : > { %v1593_v62 = vpack.c.bf16 %v718_v61, %v717_v60  ;;  %v889_v60 = vld [vmem:[#allocation4 + $0x168] sm:$0xff] }
  0x71   : > { %v1653_v61 = vpack.c.bf16 %v889_v60, %v888_v58 }
  0x72   : > { %1594 = vmatprep.subr.bf16.mxu0 %v1593_v62 }
  0x73   : > { %1596 = vmatpush3.bf16.msra.mxu0 %v1593_v62  ;;  %v890_v62 = vld [vmem:[#allocation4 + $0x170] sm:$0xff] }
  0x74   : > { %1598 = vmatprep.subr.bf16.mxu0 %v1597_v2  ;;  %v1657_v1 = vpack.c.bf16 %v891_v0, %v890_v62 }
 0x129   : > { %v1967_v3 = vpop.f32.mrb[0].mxu0 }
 0x12a   : > { %v375_v4 = vrot.slane %v1967_v3, 7  ;;  %v567_v5 = vrot.slane %v1967_v3, 1  ;;  %v1972_v6 = vpop.f32.mrb[1].mxu0 }
 0x12b   : > { %v374_v8 = vrot.slane %v1972_v6, 7  ;;  %v566_v9 = vrot.slane %v1972_v6, 1  ;;  %1275 = vmatprep.mubr.f32.mxu1 %v1972_v6 }
 0x12c   : > { %1276 = vmatmul.mubr.f32.vlgmr.msra.gmra.mrb[0].mxu1 %v1967_v3 }
 0x12d   : > { %1504 = vmatpush3.bf16.msra.mxu1 %v1501_v40  ;;  %v378_v13 = vsel %vm376_vm1, %v375_v4, %v374_v8  ;;  %v377_v14 = vsel %vm376_vm1, %v374_v8, %v375_v4  ;;  %v569_v15 = vsel %vm568_vm2, %v566_v9, %v567_v5  ;;  %v1997_v16 = vsel %vm568_vm2, %v567_v5, %v566_v9  ;;  %v1087_v40 = vld [vmem:[%s2117_s2 + $0x128] sm:$0xff]  ;;  %v1099_v4 = vld [vmem:[%s2118_s3] ss:$0 sm:$0xff] }
 0x12e   : > { %1310 = vmatprep.mubr.msk.f32.mxu1 %vm1978_vm3, %v378_v13  ;;  %1506 = vmatprep.subr.bf16.mxu1 %v1505_v7  ;;  %v1541_v41 = vpack.c.bf16 %v1087_v40, %v1086_v39  ;;  %v876_v40 = vld [vmem:[#allocation4 + $0x100] sm:$0xff] }
 0x131   : > { %1508 = vmatpush3.bf16.msra.mxu1 %v1505_v7 }
 0x132   : > { %1510 = vmatprep.subr.bf16.mxu1 %v1509_v17 }
 0x135   : > { %1512 = vmatpush3.bf16.msra.mxu1 %v1509_v17  ;;  %v1601_v17 = vpack.c.bf16 %v689_v12, %v688_v11 }
 0x136   : > { %1514 = vmatprep.subr.bf16.mxu1 %v1513_v20 }
 0x139   : > { %1516 = vmatpush3.bf16.msra.mxu1 %v1513_v20  ;;  %v690_v20 = vld [vmem:[#allocation4 + $0x20] sm:$0xff] }
 0x13a   : > { %1518 = vmatprep.subr.bf16.mxu1 %v1517_v23 }
 0x13d   : > { %1520 = vmatpush3.bf16.msra.mxu1 %v1517_v23 }
 0x13e   : > { %1522 = vmatprep.subr.bf16.mxu1 %v1521_v26 }
 0x141   : > { %1524 = vmatpush3.bf16.msra.mxu1 %v1521_v26  ;;  %v1605_v26 = vpack.c.bf16 %v691_v21, %v690_v20 }
 0x142   : > { %1526 = vmatprep.subr.bf16.mxu1 %v1525_v29 }
 0x145   : > { %1528 = vmatpush3.bf16.msra.mxu1 %v1525_v29  ;;  %v1609_v29 = vpack.c.bf16 %v693_v28, %v692_v27 }
 0x146   : > { %1530 = vmatprep.subr.bf16.mxu1 %v1529_v32 }
 0x149   : > { %1532 = vmatpush3.bf16.msra.mxu1 %v1529_v32  ;;  %v1613_v32 = vpack.c.bf16 %v695_v31, %v694_v30 }
 0x14a   : > { %1534 = vmatprep.subr.bf16.mxu1 %v1533_v35 }
 0x14c   : > { %1311 = vmatmul.mubr.f32.vlgmr.msra.gmra.mrb[0].mxu1 %v377_v14 }
 0x14d   : > { %1536 = vmatpush3.bf16.msra.mxu1 %v1533_v35  ;;  %1345 = vmatprep.mubr.f32.mxu1 %v569_v15  ;;  %v698_v35 = vld [vmem:[#allocation4 + $0x60] sm:$0xff] }
 0x14e   : > { %1538 = vmatprep.subr.bf16.mxu1 %v1537_v38  ;;  %v1621_v36 = vpack.c.bf16 %v699_v10, %v698_v35 }
 0x151   : > { %1540 = vmatpush3.bf16.msra.mxu1 %v1537_v38  ;;  %v701_v38 = vld [vmem:[#allocation4 + $0x78] sm:$0xff] }
 0x152   : > { %1542 = vmatprep.subr.bf16.mxu1 %v1541_v41  ;;  %v1625_v39 = vpack.c.bf16 %v701_v38, %v700_v37 }
 0x155   : > { %1544 = vmatpush3.bf16.msra.mxu1 %v1541_v41  ;;  %v877_v41 = vld [vmem:[#allocation4 + $0x108] sm:$0xff] }
 0x156   : > { %1546 = vmatprep.subr.bf16.mxu1 %v1545_v44  ;;  %v1629_v42 = vpack.c.bf16 %v877_v41, %v876_v40 }
 0x159   : > { %1548 = vmatpush3.bf16.msra.mxu1 %v1545_v44  ;;  %v879_v44 = vld [vmem:[#allocation4 + $0x118] sm:$0xff] }
 0x15a   : > { %1550 = vmatprep.subr.bf16.mxu1 %v1549_v47  ;;  %v1633_v45 = vpack.c.bf16 %v879_v44, %v878_v43 }
 0x15d   : > { %1552 = vmatpush3.bf16.msra.mxu1 %v1549_v47  ;;  %v881_v47 = vld [vmem:[#allocation4 + $0x128] sm:$0xff] }
 0x15e   : > { %1554 = vmatprep.subr.bf16.mxu1 %v1553_v50  ;;  %v1637_v48 = vpack.c.bf16 %v881_v47, %v880_v46 }
 0x161   : > { %1556 = vmatpush3.bf16.msra.mxu1 %v1553_v50  ;;  %v883_v50 = vld [vmem:[#allocation4 + $0x138] sm:$0xff] }
 0x162   : > { %1558 = vmatprep.subr.bf16.mxu1 %v1557_v53  ;;  %v1641_v51 = vpack.c.bf16 %v883_v50, %v882_v49 }
 0x165   : > { %1560 = vmatpush3.bf16.msra.mxu1 %v1557_v53  ;;  %v885_v53 = vld [vmem:[#allocation4 + $0x148] sm:$0xff] }
 0x166   : > { %1562 = vmatprep.subr.bf16.mxu1 %v1561_v57  ;;  %v1645_v54 = vpack.c.bf16 %v885_v53, %v884_v52 }
 0x169   : > { %1564 = vmatpush3.bf16.msra.mxu1 %v1561_v57  ;;  %v1649_v57 = vpack.c.bf16 %v887_v56, %v886_v55 }
 0x16c   : > { %1346 = vmatmul.mubr.msk.f32.vlgmr.msra.gmra.mrb[0].mxu1 %vm2080_vm4, %v1997_v16 }
 0x23f   : > { %v1347_v5 = vpop.f32.mrb[0].mxu1 }
 0x240   : > { %v677_v7 = vadd.f32 %v1347_v5, %v1099_v4  ;;  %v658_v8 = vpop.f32.mrb[1].mxu1 }
 0x241   : > { %v676_v9 = vadd.f32 %v1099_v4, %v658_v8 }
 0x242   : > { %v679_v13 = vmax.f32 %v677_v7, 0.0 }
 0x243   : > { %v678_v14 = vmax.f32 %v676_v9, 0.0 }
 0x244   : > { %v681_v15 = vrot.slane %v679_v13, 7  ;;  %v870_v16 = vrot.slane %v679_v13, 1 }
 0x245   : > { %v680_v18 = vrot.slane %v678_v14, 7  ;;  %v869_v19 = vrot.slane %v678_v14, 1  ;;  %1380 = vmatprep.mubr.f32.mxu0 %v678_v14 }
 0x246   : > { %1381 = vmatmul.mubr.f32.vlgmr.msra.gmra.mrb[2].mxu0 %v679_v13 }
 0x247   : > { %1600 = vmatpush3.bf16.msra.mxu0 %v1597_v2  ;;  %v683_v22 = vsel %vm376_vm1, %v681_v15, %v680_v18  ;;  %v682_v23 = vsel %vm376_vm1, %v680_v18, %v681_v15  ;;  %v871_v24 = vsel %vm568_vm2, %v869_v19, %v870_v16  ;;  %v2098_v25 = vsel %vm568_vm2, %v870_v16, %v869_v19 }
 0x248   : > { %1415 = vmatprep.mubr.msk.f32.mxu0 %vm1978_vm3, %v683_v22  ;;  %1602 = vmatprep.subr.bf16.mxu0 %v1601_v17 }
 0x24b   : > { %1604 = vmatpush3.bf16.msra.mxu0 %v1601_v17 }
 0x24c   : > { %1606 = vmatprep.subr.bf16.mxu0 %v1605_v26 }
 0x24f   : > { %1608 = vmatpush3.bf16.msra.mxu0 %v1605_v26 }
 0x250   : > { %1610 = vmatprep.subr.bf16.mxu0 %v1609_v29 }
 0x253   : > { %1612 = vmatpush3.bf16.msra.mxu0 %v1609_v29 }
 0x254   : > { %1614 = vmatprep.subr.bf16.mxu0 %v1613_v32 }
 0x257   : > { %1616 = vmatpush3.bf16.msra.mxu0 %v1613_v32 }
 0x258   : > { %1618 = vmatprep.subr.bf16.mxu0 %v1617_v63 }
 0x25b   : > { %1620 = vmatpush3.bf16.msra.mxu0 %v1617_v63 }
 0x25c   : > { %1622 = vmatprep.subr.bf16.mxu0 %v1621_v36 }
 0x25f   : > { %1624 = vmatpush3.bf16.msra.mxu0 %v1621_v36 }
 0x260   : > { %1626 = vmatprep.subr.bf16.mxu0 %v1625_v39 }
 0x263   : > { %1628 = vmatpush3.bf16.msra.mxu0 %v1625_v39 }
 0x264   : > { %1630 = vmatprep.subr.bf16.mxu0 %v1629_v42 }
 0x266   : > { %1416 = vmatmul.mubr.f32.vlgmr.msra.gmra.mrb[2].mxu0 %v682_v23 }
 0x267   : > { %1632 = vmatpush3.bf16.msra.mxu0 %v1629_v42  ;;  %1450 = vmatprep.mubr.f32.mxu0 %v871_v24 }
 0x268   : > { %1634 = vmatprep.subr.bf16.mxu0 %v1633_v45 }
 0x26b   : > { %1636 = vmatpush3.bf16.msra.mxu0 %v1633_v45 }
 0x26c   : > { %1638 = vmatprep.subr.bf16.mxu0 %v1637_v48 }
 0x26f   : > { %1640 = vmatpush3.bf16.msra.mxu0 %v1637_v48 }
 0x270   : > { %1642 = vmatprep.subr.bf16.mxu0 %v1641_v51 }
 0x273   : > { %1644 = vmatpush3.bf16.msra.mxu0 %v1641_v51 }
 0x274   : > { %1646 = vmatprep.subr.bf16.mxu0 %v1645_v54 }
 0x277   : > { %1648 = vmatpush3.bf16.msra.mxu0 %v1645_v54 }
 0x278   : > { %1650 = vmatprep.subr.bf16.mxu0 %v1649_v57 }
 0x27b   : > { %1652 = vmatpush3.bf16.msra.mxu0 %v1649_v57 }
 0x27c   : > { %1654 = vmatprep.subr.bf16.mxu0 %v1653_v61 }
 0x27f   : > { %1656 = vmatpush3.bf16.msra.mxu0 %v1653_v61 }
 0x280   : > { %1658 = vmatprep.subr.bf16.mxu0 %v1657_v1 }
 0x283   : > { %1660 = vmatpush3.bf16.msra.mxu0 %v1657_v1 }
 0x286   : > { %1451 = vmatmul.mubr.msk.f32.vlgmr.msra.gmra.mrb[2].mxu0 %vm2080_vm4, %v2098_v25 }
 0x359   : > { %v1452_v2 = vpop.f32.mrb[2].mxu0 }
 0x35a   : > { %v970_v4 = vadd.f32 %v1452_v2, %v1967_v3  ;;  %v958_v5 = vpop.f32.mrb[3].mxu0 }
 0x35b   : > { %v969_v7 = vadd.f32 %v958_v5, %v1972_v6 }
 0x35c   : > { %972 = vst [vmem:[%s254_s16 + $0x8] sm:$0xff] %v970_v4 }
 0x35d   : > { %971 = vst [vmem:[%s254_s16] sm:$0xff] %v969_v7 }
 0x35e PF: > { %s17_s18 = sadd.s32 1, %s1770_s18  }
 0x35f   : > { %p14_p5 = scmp.ge.s32.totalorder %s17_s18, 4  }
 0x361   :  { %16 = sbr.rel (!%p14_p5) target bundleno = 2 (0x2), region = 83 }
 0x368   :  { %994 = vsyncpa [#allocation3], 1 }
 0x369   :  { %996 = vsyncpa [#allocation3 + $0x1], 1 }
 0x36a   :  { %997 = vsyncpa [#allocation5], 1 }

</bundles_post_ra>
